<compile_context>
chip_gen: v6e
topology: v6e:2x2x1
jax: 0.10.0
libtpu: 0.0.40
codegen_flags: <defaults>
</compile_context>

<pallas_src>
import math

import jax
import jax.numpy as jnp
from jax.experimental import pallas as pl
from jax.experimental.pallas import tpu as pltpu

EPS = 1e-5


def _vmem_capacity_bytes():
    """Physical VMEM per TensorCore; conservative 64 MiB (v7x) if the query fails."""
    try:
        info = pltpu.get_tpu_info()
        cap = getattr(info, "vmem_capacity_bytes", None)
        if cap:
            return int(cap)
    except Exception:
        pass
    return 64 * 1024 * 1024


def _select_tiling(M, Cin, Cout, in_itemsize, out_itemsize, tm=None):
    """Row tile (multiple of 8) + vmem_limit derived from this chip's VMEM size."""
    vmem = _vmem_capacity_bytes()
    budget = int(vmem * 0.70)  # leave headroom for compiler-internal scratch
    # Double-buffered x tile + out tile dominate; weights / shift / stats partials
    # are small fixed cost.
    per_row = 2 * (Cin * in_itemsize + Cout * out_itemsize)
    fixed = 2 * (Cin * Cout * in_itemsize + Cout * 4) + 2 * (Cin + Cin * Cin) * 4
    if tm is None:
        tm = (budget - fixed) // max(per_row, 1)
        tm = max(256, min(8192, (tm // 256) * 256))
        tm = min(tm, max(8, ((M + 7) // 8) * 8))        # don't exceed (rounded-up) M
        if M >= 16 and pl.cdiv(M, tm) < 2:
            # Keep >= 2 parallel tiles so both v7x TensorCores get work.
            tm = max(8, ((pl.cdiv(M, 2) + 7) // 8) * 8)
    vmem_limit = int(min(budget, max(16 * 1024 * 1024, 2 * (fixed + per_row * tm))))
    return tm, vmem_limit


def conv_bn_relu_kernel(x_ref, w_ref, shift_ref, o_ref):
    """1x1 conv with BN-scale pre-folded into w, then `+ shift` and ReLU."""
    z = jnp.dot(x_ref[...], w_ref[...], preferred_element_type=jnp.float32)
    o_ref[...] = jnp.maximum(z + shift_ref[...], 0.0).astype(o_ref.dtype)


def conv2d_forward(x, weight, bias, gamma, beta, *, compute_dtype=jnp.bfloat16, tm=None):
    """x: (B, d1, d2, Cin). weight: (Cout, Cin, 1, 1). Returns (B, d1, d2, Cout) in x.dtype.

    `bias` is accepted for API fidelity but is mathematically cancelled by the
    training-mode BatchNorm mean subtraction, so it is not used in the compute.
    """
    del bias  # cancelled by train-mode BN (and zero-initialized in the module)

    B, d1, d2, Cin = x.shape
    Cout = weight.shape[0]
    M = B * d1 * d2
    out_dtype = x.dtype

    # MXU operands in compute_dtype (bf16-native MXU on v5e/v6e/v7x); all
    # accumulation and BN statistics stay f32.
    x2 = x.reshape(M, Cin)
    if x2.dtype != compute_dtype:
        x2 = x2.astype(compute_dtype)
    w2_f32 = weight.reshape(Cout, Cin).T.astype(jnp.float32)       # (Cin, Cout)

    in_itemsize = jnp.dtype(compute_dtype).itemsize
    out_itemsize = jnp.dtype(out_dtype).itemsize
    tm, vmem_limit = _select_tiling(M, Cin, Cout, in_itemsize, out_itemsize, tm=tm)

    n_tiles = pl.cdiv(M, tm)
    needs_mask = (M % tm) != 0   # ragged last tile -> mask rows >= M in the stats

    cparams = pltpu.CompilerParams(
        dimension_semantics=("parallel",),
        vmem_limit_bytes=vmem_limit,
    )

    # ---- Pass 1: per-tile, Cout-independent statistics (sum_x, Gram = x^T x). ----
    def stats_kernel(x_ref, sumx_ref, gram_ref):
        xb = x_ref[...]
        if needs_mask:
            rows = (jax.lax.broadcasted_iota(jnp.int32, (tm, 1), 0)
                    + pl.program_id(0) * tm)
            xb = jnp.where(rows < M, xb, jnp.zeros_like(xb))
        xf = xb.astype(jnp.float32)
        sumx_ref[...] = jnp.sum(xf, axis=0, keepdims=True)[None]        # (1,1,Cin)
        gram_ref[...] = jax.lax.dot_general(                            # (1,Cin,Cin)
            xf, xf, (((0,), (0,)), ((), ())),
            preferred_element_type=jnp.float32)[None]

    sumx_p, gram_p = pl.pallas_call(
        stats_kernel,
        out_shape=(jax.ShapeDtypeStruct((n_tiles, 1, Cin), jnp.float32),
                   jax.ShapeDtypeStruct((n_tiles, Cin, Cin), jnp.float32)),
        grid_spec=pltpu.PrefetchScalarGridSpec(
            num_scalar_prefetch=0,
            grid=(n_tiles,),
            in_specs=[pl.BlockSpec((tm, Cin), lambda i: (i, 0))],
            out_specs=[pl.BlockSpec((1, 1, Cin), lambda i: (i, 0, 0)),
                       pl.BlockSpec((1, Cin, Cin), lambda i: (i, 0, 0))],
        ),
        compiler_params=cparams,
        cost_estimate=pl.CostEstimate(
            flops=2 * M * Cin * Cin + M * Cin,
            transcendentals=0,
            bytes_accessed=M * Cin * in_itemsize + 4 * n_tiles * (Cin + Cin * Cin),
        ),
    )(x2)

    # ---- Tiny reduction + BN affine fold in plain JAX. ----
    sum_x = jnp.sum(sumx_p, axis=0)[0]                      # (Cin,)
    gram = jnp.sum(gram_p, axis=0)                          # (Cin, Cin)
    mean_x = sum_x / M
    exx = gram / M                                          # E[x x^T]
    mean_z = mean_x @ w2_f32                                # (Cout,)
    ez2 = jnp.sum(w2_f32 * (exx @ w2_f32), axis=0)          # diag(W^T E[xx^T] W)
    var = jnp.maximum(ez2 - mean_z * mean_z, 0.0)           # biased (training-mode BN)
    scale = gamma.astype(jnp.float32) * jax.lax.rsqrt(var + EPS)       # (Cout,)
    shift = (beta.astype(jnp.float32) - mean_z * scale).reshape(1, Cout)
    w_scaled = (w2_f32 * scale[None, :]).astype(compute_dtype)         # (Cin, Cout)

    # ---- Pass 2: fused conv recompute (scale folded into W) + shift + ReLU. ----
    out = pl.pallas_call(
        conv_bn_relu_kernel,
        out_shape=jax.ShapeDtypeStruct((M, Cout), out_dtype),
        grid_spec=pltpu.PrefetchScalarGridSpec(
            num_scalar_prefetch=0,
            grid=(n_tiles,),
            in_specs=[
                pl.BlockSpec((tm, Cin), lambda i: (i, 0)),
                pl.BlockSpec((Cin, Cout), lambda i: (0, 0)),
                pl.BlockSpec((1, Cout), lambda i: (0, 0)),
            ],
            out_specs=pl.BlockSpec((tm, Cout), lambda i: (i, 0)),
        ),
        compiler_params=cparams,
        cost_estimate=pl.CostEstimate(
            flops=2 * M * Cin * Cout + 2 * M * Cout,
            transcendentals=0,
            bytes_accessed=(M * Cin * in_itemsize + Cin * Cout * in_itemsize
                            + 4 * Cout + M * Cout * out_itemsize),
        ),
    )(x2, w_scaled, shift)

    return out.reshape(B, d1, d2, Cout)


def reference_forward(x, weight, bias, gamma, beta):
    """Pure-JAX reference mirroring the PyTorch module (1x1 conv, train-mode BN, ReLU)."""
    B, d1, d2, Cin = x.shape
    Cout = weight.shape[0]
    w2 = weight.reshape(Cout, Cin)
    z = jnp.einsum("btnc,oc->btno", x, w2) + bias.reshape(1, 1, 1, Cout)
    mean = jnp.mean(z, axis=(0, 1, 2), keepdims=True)
    var = jnp.mean((z - mean) ** 2, axis=(0, 1, 2), keepdims=True)  # biased
    y = (z - mean) / jnp.sqrt(var + EPS) * gamma.reshape(1, 1, 1, Cout) + beta.reshape(1, 1, 1, Cout)
    return jnp.maximum(y, 0.0)


if __name__ == "__main__":
    # Small shapes consistent with GMAN usage: (batch, num_steps, num_nodes, input_dims)
    B, T, N, Cin, Cout = 2, 8, 16, 4, 32

    key = jax.random.PRNGKey(0)
    kx, kw = jax.random.split(key)

    x = jax.random.normal(kx, (B, T, N, Cin), dtype=jnp.float32)

    # Deterministic parameter init matching the PyTorch module's __init__:
    #   conv.weight: xavier_uniform over (Cout, Cin, 1, 1); conv.bias: zeros
    #   BN: gamma=1, beta=0
    fan_in, fan_out = Cin * 1 * 1, Cout * 1 * 1
    bound = math.sqrt(6.0 / (fan_in + fan_out))
    weight = jax.random.uniform(kw, (Cout, Cin, 1, 1), dtype=jnp.float32,
                                minval=-bound, maxval=bound)
    bias = jnp.zeros((Cout,), dtype=jnp.float32)
    gamma = jnp.ones((Cout,), dtype=jnp.float32)
    beta = jnp.zeros((Cout,), dtype=jnp.float32)

    ref = jax.block_until_ready(reference_forward(x, weight, bias, gamma, beta))

    # f32 compute path: validates the two-pass algorithm exactly
    # (auto tiling -> two 128-row tiles feeding both v7x TensorCores).
    out_f32 = jax.block_until_ready(
        conv2d_forward(x, weight, bias, gamma, beta, compute_dtype=jnp.float32))
    assert out_f32.shape == (B, T, N, Cout)
    assert jnp.allclose(out_f32, ref, atol=1e-4, rtol=1e-4), "mismatch (f32)"

    # f32 with an odd explicit tile: exercises the ragged last block (masked
    # stats rows + Pallas-masked output stores), with no padding/slicing copies.
    out_ragged = jax.block_until_ready(
        conv2d_forward(x, weight, bias, gamma, beta, compute_dtype=jnp.float32, tm=96))
    assert jnp.allclose(out_ragged, ref, atol=1e-4, rtol=1e-4), "mismatch (ragged tm=96)"

    # Default bf16 MXU-operand path (f32 accumulation / BN statistics); bf16
    # rounding of the conv operands bounds the error well inside 5e-2.
    out_bf16 = jax.block_until_ready(conv2d_forward(x, weight, bias, gamma, beta))
    assert out_bf16.shape == (B, T, N, Cout)
    assert jnp.allclose(out_bf16, ref, atol=5e-2, rtol=5e-2), "mismatch (bf16)"

    print("KERNEL_OK")
</pallas_src>

<mosaic_0001>
module attributes {stable_mosaic.version = 11 : i64} {
  func.func @stats_kernel(%arg0: i32, %arg1: memref<128x4xf32, #tpu.memory_space<vmem>>, %arg2: memref<1x1x4xf32, #tpu.memory_space<vmem>>, %arg3: memref<1x4x4xf32, #tpu.memory_space<vmem>>) attributes {dimension_semantics = [#tpu.dimension_semantics<parallel>], iteration_bounds = array<i64: 2>, scalar_prefetch = 0 : i64, scratch_operands = 0 : i64, tpu.core_type = #tpu.core_type<tc>, window_params = [{transform_indices = @transform_0, window_bounds = array<i64: 128, 4>}, {transform_indices = @transform_1, window_bounds = array<i64: 1, 1, 4>}, {transform_indices = @transform_2, window_bounds = array<i64: 1, 4, 4>}]} {
    %c0 = arith.constant 0 : index
    %c0_0 = arith.constant 0 : index
    %0 = vector.load %arg1[%c0, %c0_0] : memref<128x4xf32, #tpu.memory_space<vmem>>, vector<128x4xf32>
    %cst = arith.constant dense<0.000000e+00> : vector<4xf32>
    %1 = vector.multi_reduction <add>, %0, %cst [0] : vector<128x4xf32> to vector<4xf32>
    %2 = vector.shape_cast %1 : vector<4xf32> to vector<1x4xf32>
    %3 = vector.shape_cast %2 : vector<1x4xf32> to vector<1x1x4xf32>
    %c0_1 = arith.constant 0 : index
    %c0_2 = arith.constant 0 : index
    %c0_3 = arith.constant 0 : index
    %4 = vector.load %arg2[%c0_1, %c0_2, %c0_3] : memref<1x1x4xf32, #tpu.memory_space<vmem>>, vector<1x1x4xf32>
    tpu.vector_store %arg2[%c0_1, %c0_2, %c0_3], %3 {strides = array<i32>} : memref<1x1x4xf32, #tpu.memory_space<vmem>>, vector<1x1x4xf32>,
    %cst_4 = arith.constant dense<0.000000e+00> : vector<4x4xf32>
    %5 = tpu.matmul %0, %0, %cst_4 {dimension_numbers = #tpu.dot_dimension_numbers<[0], [0], [1], [1], [0, 1, 1, 1], [], []>} : vector<128x4xf32>, vector<128x4xf32>, vector<4x4xf32> -> vector<4x4xf32>
    %6 = vector.shape_cast %5 : vector<4x4xf32> to vector<1x4x4xf32>
    %c0_5 = arith.constant 0 : index
    %c0_6 = arith.constant 0 : index
    %c0_7 = arith.constant 0 : index
    %7 = vector.load %arg3[%c0_5, %c0_6, %c0_7] : memref<1x4x4xf32, #tpu.memory_space<vmem>>, vector<1x4x4xf32>
    tpu.vector_store %arg3[%c0_5, %c0_6, %c0_7], %6 {strides = array<i32>} : memref<1x4x4xf32, #tpu.memory_space<vmem>>, vector<1x4x4xf32>,
    return
  }
  func.func @transform_0(%arg0: i32) -> (i32, i32) {
    %c0_i32 = arith.constant 0 : i32
    %c0_i32_0 = arith.constant 0 : i32
    return %arg0, %c0_i32 : i32, i32
  }
  func.func @transform_1(%arg0: i32) -> (i32, i32, i32) {
    %c0_i32 = arith.constant 0 : i32
    %c0_i32_0 = arith.constant 0 : i32
    %c0_i32_1 = arith.constant 0 : i32
    return %arg0, %c0_i32, %c0_i32_0 : i32, i32, i32
  }
  func.func @transform_2(%arg0: i32) -> (i32, i32, i32) {
    %c0_i32 = arith.constant 0 : i32
    %c0_i32_0 = arith.constant 0 : i32
    %c0_i32_1 = arith.constant 0 : i32
    return %arg0, %c0_i32, %c0_i32_0 : i32, i32, i32
  }
}

</mosaic_0001>

<bundles_post_ra>
// kernel: tpu_custom_call.1
= control target key start
LH: loop header
LB: loop body
LE: loop exit
PB: predicated region body
PF: predicated region fallthrough
CT: control target
= control target key end

     0   :  { %8 = vsyncpa [#allocation3], 0  ;;  %s868_s0 = inlined_call_operand.vmem [shape: f32[256,4], index: 0, kind: input, shape index: {}]   ;;  %s869_s1 = inlined_call_operand.hbm [shape: f32[2,1,4], index: 1, kind: output, shape index: {0}]   ;;  %s870_s2 = inlined_call_operand.hbm [shape: f32[2,4,4], index: 2, kind: output, shape index: {1}]  }
   0x1   :  { %10 = vsyncpa [#allocation3 + $0x1], 0 }
   0x2   :  { %11 = vsyncpa [#allocation5], 0 }
   0x3   :  { %13 = vsyncpa [#allocation5 + $0x1], 0  ;;  %s653_s9 = smov 0   ;;  %s655_s10 = smov 0  }
   0x4   :  { %s657_s11 = smov 0   ;;  %s659_s12 = smov 0  }
   0x5 LB: > { %s674_s13 = sadd.s32 4294967295, %s632_s12   ;;  %s432_s14 = sadd.s32 4294967294, %s632_s12   ;;  %s632_s12 = sphi %s659_s12, %s876_s12   ;;  %s628_s11 = sphi %s657_s11, %s875_s11   ;;  %s624_s10 = sphi %s655_s10, %s874_s10   ;;  %s620_s9 = sphi %s653_s9, %s873_s9  }
   0x6   : > { %s678_s15 = sadd.s32 1, %s632_s12   ;;  %s52_s16 = sadd.s32 1, %s628_s11 }
   0x7   : > { %s49_s17 = ssub.s32 %s632_s12, %s678_s15  ;;  %p62_p0 = scmp.ne.s32.totalorder %s628_s11, %s624_s10 }
   0x8   : > { %p50_p1 = scmp.eq.s32.totalorder %s49_s17, 0  ;;  %p63_p2 = scmp.eq.s32.totalorder %s674_s13, 1 }
   0x9   : > { %p68_p3 = scmp.ne.s32.totalorder %s624_s10, %s620_s9  ;;  %p69_p4 = scmp.eq.s32.totalorder %s432_s14, 1 }
   0xa   : > { %s689_s18 = scalar_select %p50_p1, %s628_s11, %s52_s16  }
   0xb   : > { %p691_p5 = por %p63_p2, %p62_p0  ;;  %p695_p6 = por %p69_p4, %p68_p3 }
   0xc   : > { %p435_p7 = scmp.ge.s32.totalorder %s632_s12, 1  ;;  %p122_p8 = scmp.lt.s32.totalorder %s632_s12, 3 }
   0xe   : > { %p123_p9 = pnand %p435_p7, %p122_p8 }
   0xf   : > { %s702_s21 = sshll.u32 (!%p123_p9), %s674_s13, 4  ;;  %s801_s27 = sand.u32 (!%p123_p9), 1, %s624_s10  }
  0x10   : > { %126 = sbr.rel (%p123_p9) target bundleno = 358 (0x166), region = 24  ;;  %p149_p10 = scmp.lt.s32.totalorder (!%p123_p9), %s702_s21, 31 }
  0x11   : > { %s140_s28 = scalar_lea.vmem (!%p123_p9), [#allocation2], %s801_s27  ;;  %s330_s4 = scalar_lea.hbm (!%p123_p9), %s869_s1, %s702_s21 }
  0x12   : > { %s332_s29 = sshll.u32 (!%p123_p9), %s140_s28, 4  ;;  %s315_s5 = scalar_lea.sflag (!%p123_p9), [#allocation3], %s801_s27  ;;  %s333_s29 = int_to_ptr.vmem [resolvable:$true] %s332_s29 }
  0x13   : > { %s542_s6 = scalar_lea.vmem (!%p123_p9), %s333_s29, 16  ;;  %s636_s7 = smov (!%p123_p9), [#allocation2]  }
  0x14   : > { %p543_p11 = scmp.ne.s32.totalorder (!%p123_p9), %s333_s29, %s542_s6  ;;  %s546_s8 = sshll.u32 (!%p123_p9), %s636_s7, 4  ;;  %s547_s8 = int_to_ptr.vmem [resolvable:$false] %s546_s8 }
  0x15   : > { %v634_v0 = vmov 0.0   ;;  %s150_s22 = scalar_select %p149_p10, %s702_s21, 31  ;;  %vm635_vm0 = vmmov 0   ;;  %vm170_vm1 = vcmask 31744   ;;  %vm208_vm2 = vcmask 24576  }
  0x16   : > { %461 = vmatprep.subr.mxu0 %v634_v0  ;;  %493 = vmatprep.mubr.msk.f32.mxu0 %vm635_vm0, %v634_v0  ;;  %p544_p12 = pnand %p543_p11, %p691_p5  ;;  %s548_s14 = scalar_lea.vmem %s547_s8, 32 }
  0x17   : > { %s438_s23 = sshll.u32 %s150_s22, 3  ;;  %p549_p0 = scmp.lt.s32.totalorder %s333_s29, %s547_s8 }
  0x18   : > { %s711_s26 = scalar_lea.vmem %s868_s0, %s438_s23  ;;  %p545_p13 = pneg %p544_p12 }
  0x19   : > { %v714_v1 = vld [vmem:[%s711_s26] sm:$0xff]  ;;  %v717_v2 = vld [vmem:[%s711_s26 + $0x8] sm:$0xff]  ;;  %v720_v3 = vld [vmem:[%s711_s26 + $0x10] sm:$0xff]  ;;  %p550_p1 = scmp.lt.s32.totalorder %s548_s14, %s542_s6 }
  0x1a   : > { %v171_v4 = vsel %vm170_vm1, %v714_v1, 0.0  ;;  %210 = vxpose.xlu0.b32.start [1/16] (narrow) %v714_v1, 8  ;;  %v172_v5 = vsel %vm170_vm1, %v717_v2, 0.0  ;;  %v174_v6 = vsel %vm170_vm1, %v720_v3, 0.0  ;;  %v730_v8 = vld [vmem:[%s711_s26 + $0x18] sm:$0xff]  ;;  %v735_v11 = vld [vmem:[%s711_s26 + $0x20] sm:$0xff] }
  0x1b   : > { %v173_v7 = vadd.f32 %v172_v5, %v171_v4  ;;  %v176_v9 = vsel %vm170_vm1, %v730_v8, 0.0  ;;  %v178_v12 = vsel %vm170_vm1, %v735_v11, 0.0  ;;  %v741_v13 = vld [vmem:[%s711_s26 + $0x78] sm:$0xff]  ;;  %v159_v15 = vld [vmem:[%s711_s26 + $0x28] sm:$0xff]  ;;  %v747_v17 = vld [vmem:[%s711_s26 + $0x70] sm:$0xff]  ;;  %p551_p2 = por %p550_p1, %p549_p0 }
  0x1c   : > { %462 = vmatpush3.msra.mxu0 %v741_v13  ;;  %v180_v16 = vsel %vm170_vm1, %v159_v15, 0.0  ;;  %v160_v19 = vld [vmem:[%s711_s26 + $0x30] sm:$0xff]  ;;  %v755_v21 = vld [vmem:[%s711_s26 + $0x68] sm:$0xff]  ;;  %v161_v23 = vld [vmem:[%s711_s26 + $0x38] sm:$0xff]  ;;  %v198_v43 = vsel %vm170_vm1, %v747_v17, 0.0  ;;  %v200_v45 = vsel %vm170_vm1, %v741_v13, 0.0 }
  0x1d   : > { %v175_v10 = vadd.f32 %v174_v6, %v173_v7  ;;  %463 = vmatprep.subr.mxu0 %v634_v0  ;;  %v182_v20 = vsel %vm170_vm1, %v160_v19, 0.0  ;;  %v184_v24 = vsel %vm170_vm1, %v161_v23, 0.0  ;;  %v166_v25 = vld [vmem:[%s711_s26 + $0x60] sm:$0xff]  ;;  %v165_v29 = vld [vmem:[%s711_s26 + $0x58] sm:$0xff]  ;;  %v163_v31 = vld [vmem:[%s711_s26 + $0x48] sm:$0xff]  ;;  %v196_v41 = vsel %vm170_vm1, %v755_v21, 0.0  ;;  %p552_p3 = pnand %p551_p2, %p545_p13 }
  0x1e   : > { %211 = vxpose.xlu0.b32.cont [2/16] (narrow) %v717_v2, 8  ;;  %464 = vmatpush3.msra.mxu0 %v747_v17  ;;  %v162_v27 = vld [vmem:[%s711_s26 + $0x40] sm:$0xff]  ;;  %v188_v32 = vsel %vm170_vm1, %v163_v31, 0.0  ;;  %v164_v33 = vld [vmem:[%s711_s26 + $0x50] sm:$0xff]  ;;  %v192_v37 = vsel %vm170_vm1, %v165_v29, 0.0  ;;  %v194_v39 = vsel %vm170_vm1, %v166_v25, 0.0 }
  0x1f   : > { %v177_v14 = vadd.f32 %v176_v9, %v175_v10  ;;  %465 = vmatprep.subr.mxu0 %v634_v0  ;;  %v186_v28 = vsel %vm170_vm1, %v162_v27, 0.0  ;;  %v190_v35 = vsel %vm170_vm1, %v164_v33, 0.0 }
  0x20   : > { %466 = vmatpush3.msra.mxu0 %v755_v21 }
  0x21   : > { %v179_v18 = vadd.f32 %v178_v12, %v177_v14  ;;  %467 = vmatprep.subr.mxu0 %v634_v0 }
  0x22   : > { %212 = vxpose.xlu0.b32.cont [3/16] (narrow) %v720_v3, 8  ;;  %468 = vmatpush3.msra.mxu0 %v166_v25 }
  0x23   : > { %v181_v22 = vadd.f32 %v180_v16, %v179_v18  ;;  %469 = vmatprep.subr.mxu0 %v634_v0 }
  0x24   : > { %470 = vmatpush3.msra.mxu0 %v165_v29 }
  0x25   : > { %v183_v26 = vadd.f32 %v182_v20, %v181_v22  ;;  %471 = vmatprep.subr.mxu0 %v634_v0 }
  0x26   : > { %213 = vxpose.xlu0.b32.cont [4/16] (narrow) %v730_v8, 8  ;;  %472 = vmatpush3.msra.mxu0 %v164_v33 }
  0x27   : > { %v185_v30 = vadd.f32 %v184_v24, %v183_v26  ;;  %473 = vmatprep.subr.mxu0 %v634_v0 }
  0x28   : > { %474 = vmatpush3.msra.mxu0 %v163_v31 }
  0x29   : > { %v187_v34 = vadd.f32 %v186_v28, %v185_v30  ;;  %475 = vmatprep.subr.mxu0 %v634_v0 }
  0x2a   : > { %214 = vxpose.xlu0.b32.cont [5/16] (narrow) %v735_v11, 8  ;;  %476 = vmatpush3.msra.mxu0 %v162_v27 }
  0x2b   : > { %v189_v36 = vadd.f32 %v188_v32, %v187_v34  ;;  %477 = vmatprep.subr.mxu0 %v634_v0 }
  0x2c   : > { %478 = vmatpush3.msra.mxu0 %v161_v23 }
  0x2d   : > { %v191_v38 = vadd.f32 %v190_v35, %v189_v36  ;;  %479 = vmatprep.subr.mxu0 %v634_v0 }
  0x2e   : > { %215 = vxpose.xlu0.b32.cont [6/16] (narrow) %v159_v15, 8  ;;  %480 = vmatpush3.msra.mxu0 %v160_v19 }
  0x2f   : > { %v193_v40 = vadd.f32 %v192_v37, %v191_v38  ;;  %481 = vmatprep.subr.mxu0 %v634_v0 }
  0x30   : > { %482 = vmatpush3.msra.mxu0 %v159_v15 }
  0x31   : > { %v195_v42 = vadd.f32 %v194_v39, %v193_v40  ;;  %483 = vmatprep.subr.mxu0 %v634_v0 }
  0x32   : > { %216 = vxpose.xlu0.b32.cont [7/16] (narrow) %v160_v19, 8  ;;  %484 = vmatpush3.msra.mxu0 %v735_v11 }
  0x33   : > { %v197_v44 = vadd.f32 %v196_v41, %v195_v42  ;;  %485 = vmatprep.subr.mxu0 %v634_v0 }
  0x34   : > { %486 = vmatpush3.msra.mxu0 %v730_v8 }
  0x35   : > { %v199_v46 = vadd.f32 %v198_v43, %v197_v44  ;;  %487 = vmatprep.subr.mxu0 %v634_v0 }
  0x36   : > { %217 = vxpose.xlu0.b32.cont [8/16] (narrow) %v161_v23, 8  ;;  %488 = vmatpush3.msra.mxu0 %v720_v3 }
  0x37   : > { %v201_v47 = vadd.f32 %v200_v45, %v199_v46  ;;  %489 = vmatprep.subr.mxu0 %v634_v0 }
  0x38   : > { %490 = vmatpush3.msra.mxu0 %v717_v2 }
  0x39   : > { %491 = vmatprep.subr.mxu0 %v634_v0  ;;  %v202_v49 = vrot.slane %v201_v47, 4 }
  0x3a   : > { %218 = vxpose.xlu0.b32.cont [9/16] (narrow) %v162_v27, 8  ;;  %492 = vmatpush3.msra.mxu0 %v714_v1 }
  0x3b   : > { %v203_v50 = vadd.f32 %v202_v49, %v201_v47 }
  0x3d   : > { %v204_v51 = vrot.slane %v203_v50, 2 }
  0x3e   : > { %219 = vxpose.xlu0.b32.cont [10/16] (narrow) %v163_v31, 8 }
  0x3f   : > { %v205_v52 = vadd.f32 %v204_v51, %v203_v50 }
  0x41   : > { %v206_v53 = vrot.slane %v205_v52, 1 }
  0x42   : > { %220 = vxpose.xlu0.b32.cont [11/16] (narrow) %v164_v33, 8 }
  0x43   : > { %v207_v54 = vadd.f32 %v206_v53, %v205_v52 }
  0x45   : > { %209 = vst.msk [vmem:[%s140_s28] sm:$0x1] %vm208_vm2, %v207_v54 }
  0x46   : > { %221 = vxpose.xlu0.b32.cont [12/16] (narrow) %v165_v29, 8 }
  0x4a   : > { %222 = vxpose.xlu0.b32.cont [13/16] (narrow) %v166_v25, 8 }
  0x4e   : > { %223 = vxpose.xlu0.b32.cont [14/16] (narrow) %v755_v21, 8 }
  0x52   : > { %224 = vxpose.xlu0.b32.cont [15/16] (narrow) %v747_v17, 8 }
  0x56   : > { %225 = vxpose.xlu0.b32.end [16/16] (narrow) %v741_v13, 8 }
  0x96   : > { %v226_v48 = vpop.trf.xlu0 }
  0x97   : > { %494 = vmatmul.mubr.f32.vlgmr.msra.gmra.mxu0 %v226_v48 }
  0x98   : > { %555 = shalt.err (!%p552_p3)
}
  0x99   : > { %s556_s16 = scalar_lea.hbm %s330_s4, 16  ;;  %s560_s22 = scalar_lea.hbm %s869_s1, 32 }
  0x9a   : > { %p557_p4 = scmp.ne.s32.totalorder %s330_s4, %s556_s16  ;;  %p561_p9 = scmp.lt.s32.totalorder %s330_s4, %s869_s1 }
  0x9b   : > { %p562_p10 = scmp.lt.s32.totalorder %s560_s22, %s556_s16 }
  0x9c   : > { %p558_p7 = pnand %p557_p4, %p691_p5 }
  0x9d   : > { %p563_p11 = por %p562_p10, %p561_p9 }
  0x9e   : > { %p559_p8 = pneg %p558_p7 }
  0xa0   : > { %p564_p12 = pnand %p563_p11, %p559_p8 }
  0xa2   : > { %567 = shalt.err (!%p564_p12)
}
  0xa3   : > { %496 = dma.vmem_to_hbm [thread:$0]  (%p691_p5), %s333_s29, 16, %s330_s4, %s315_s5   ;;  %vm312_vm3 = vcmask 27648  }
  0xa4   : > { %s436_s25 = sshll.u32 %s801_s27, 2  ;;  %s441_s26 = sshll.u32 %s674_s13, 6 }
  0xa5   : > { %s147_s28 = scalar_lea.vmem [#allocation4], %s436_s25  ;;  %s826_s7 = scalar_lea.hbm %s870_s2, %s441_s26 }
  0xa6   : > { %s345_s30 = sshll.u32 %s147_s28, 4  ;;  %s319_s8 = scalar_lea.sflag [#allocation5], %s801_s27  ;;  %s828_s30 = int_to_ptr.vmem [resolvable:$true] %s345_s30 }
  0xa7   : > { %s568_s29 = scalar_lea.vmem %s828_s30, 64  ;;  %s637_s13 = smov [#allocation4]  }
  0xa8   : > { %p569_p13 = scmp.ne.s32.totalorder %s828_s30, %s568_s29  ;;  %s572_s4 = sshll.u32 %s637_s13, 4  ;;  %s573_s4 = int_to_ptr.vmem [resolvable:$false] %s572_s4 }
  0xa9   : > { %s574_s5 = scalar_lea.vmem %s573_s4, 128  ;;  %p575_p2 = scmp.lt.s32.totalorder %s828_s30, %s573_s4 }
  0xaa   : > { %p570_p0 = pnand %p569_p13, %p691_p5  ;;  %p576_p3 = scmp.lt.s32.totalorder %s574_s5, %s568_s29 }
  0xac   : > { %p571_p1 = pneg %p570_p0  ;;  %p577_p4 = por %p576_p3, %p575_p2 }
  0xae   : > { %p578_p7 = pnand %p577_p4, %p571_p1 }
 0x157   : > { %v308_v55 = vpop.f32.mrf.mxu0 }
 0x158   : > { %313 = vst.msk [vmem:[%s147_s28] sm:$0xf] %vm312_vm3, %v308_v55 }
 0x159   : > { %v495_v56 = vpop.f32.mrf.mxu0 }
 0x15a   : > { %581 = shalt.err (!%p578_p7)
}
 0x15b   : > { %s582_s14 = scalar_lea.hbm %s826_s7, 64  ;;  %s586_s17 = scalar_lea.hbm %s870_s2, 128 }
 0x15c   : > { %p583_p8 = scmp.ne.s32.totalorder %s826_s7, %s582_s14  ;;  %p587_p11 = scmp.lt.s32.totalorder %s826_s7, %s870_s2 }
 0x15d   : > { %p588_p12 = scmp.lt.s32.totalorder %s586_s17, %s582_s14 }
 0x15e   : > { %p584_p9 = pnand %p583_p8, %p691_p5 }
 0x15f   : > { %p589_p13 = por %p588_p12, %p587_p11 }
 0x160   : > { %p585_p10 = pneg %p584_p9 }
 0x162   : > { %p590_p0 = pnand %p589_p13, %p585_p10 }
 0x164   : > { %593 = shalt.err (!%p590_p0)
}
 0x165   : > { %497 = dma.vmem_to_hbm [thread:$0]  (%p691_p5), %s828_s30, 64, %s826_s7, %s319_s8  }
 0x166 PF: > { %p507_p1 = scmp.ge.s32.totalorder %s632_s12, 2  ;;  %s357_s23 = sand.u32 1, %s620_s9  }
 0x167   : > { %s358_s24 = scalar_lea.sflag [#allocation3], %s357_s23 }
 0x168   : > { %p501_p2 = pnand %p507_p1, %p695_p6 }
 0x16a   : > { %p502_p3 = pneg %p501_p2 }
 0x16c   : > { %611 = dma.done.wait (%p502_p3), %s358_s24, 16  }
 0x16d   : > { %613 = vsyncadd (%p502_p3), %s358_s24, 4294967280  ;;  %s366_s25 = scalar_lea.sflag [#allocation5], %s357_s23 }
 0x16e   : > { %615 = dma.done.wait (%p502_p3), %s366_s25, 64  }
 0x16f   : > { %617 = vsyncadd (%p502_p3), %s366_s25, 4294967232  ;;  %p16_p5 = scmp.ge.s32.totalorder %s678_s15, 4   ;;  %s873_s9 = smov %s624_s10 }
 0x170   : > { %s874_s10 = smov %s628_s11  ;;  %s875_s11 = smov %s689_s18 }
 0x171   : > { %s876_s12 = smov %s678_s15  ;;  %18 = sbr.rel (!%p16_p5) target bundleno = 5 (0x5), region = 76 }
 0x176   :  { %371 = vsyncpa [#allocation3], 1 }
 0x177   :  { %373 = vsyncpa [#allocation3 + $0x1], 1 }
 0x178   :  { %374 = vsyncpa [#allocation5], 1 }
 0x179   :  { %376 = vsyncpa [#allocation5 + $0x1], 1 }

</bundles_post_ra>
